<compile_context>
chip_gen: v7x
topology: tpu7x:2x2x1
jax: 0.10.0
libtpu: 0.0.40
codegen_flags: <defaults>
</compile_context>

<pallas_src>
import functools

import jax
import jax.numpy as jnp
from jax import lax
from jax.experimental import pallas as pl
from jax.experimental.pallas import tpu as pltpu

LN_EPS = 1e-6  # partial(nn.LayerNorm, eps=1e-6)


# ---------------------------------------------------------------------------
# Kernels
# ---------------------------------------------------------------------------
def _layernorm(x, gamma, beta):
    """LayerNorm over the last axis, rsqrt on the EUP."""
    mu = jnp.mean(x, axis=-1, keepdims=True)
    xc = x - mu
    var = jnp.mean(xc * xc, axis=-1, keepdims=True)
    return xc * lax.rsqrt(var + LN_EPS) * gamma + beta


def patch_embed_kernel(p_ref, w_ref, b_ref, e_ref, o_ref):
    """One frame: tokens = patches @ Wp + bp + (pos_embed[n] + time_embed[t])."""
    o_ref[0] = (jnp.dot(p_ref[0], w_ref[...], preferred_element_type=jnp.float32)
                + b_ref[...] + e_ref[0]).astype(o_ref.dtype)


def attention_kernel(x_ref, g_ref, b_ref, wqkv_ref, bqkv_ref, wp_ref, bp_ref,
                     o_ref, *, num_heads, scale, add_residual):
    """One sequence: (optionally x +) proj(MHSA(LayerNorm(x)))."""
    x = x_ref[0]                                             # (N, C)
    n, c = x.shape
    hd = c // num_heads

    xn = _layernorm(x, g_ref[...], b_ref[...])
    qkv = jnp.dot(xn, wqkv_ref[...],
                  preferred_element_type=jnp.float32) + bqkv_ref[...]   # (N, 3C)

    acc = jnp.zeros((n, c), jnp.float32)
    for h in range(num_heads):                               # static unroll
        q = qkv[:, h * hd:(h + 1) * hd]
        k = qkv[:, c + h * hd:c + (h + 1) * hd]
        v = qkv[:, 2 * c + h * hd:2 * c + (h + 1) * hd]
        s = lax.dot_general(q, k, (((1,), (1,)), ((), ())),
                            preferred_element_type=jnp.float32) * scale
        s = s - jnp.max(s, axis=-1, keepdims=True)
        p = jnp.exp(s)
        p = p / jnp.sum(p, axis=-1, keepdims=True)
        o_h = jnp.dot(p, v, preferred_element_type=jnp.float32)         # (N, hd)
        # concat(o_h) @ Wproj  ==  sum_h o_h @ Wproj[h*hd:(h+1)*hd, :]
        acc = acc + jnp.dot(o_h, wp_ref[h * hd:(h + 1) * hd, :],
                            preferred_element_type=jnp.float32)
    out = acc + bp_ref[...]
    if add_residual:
        out = out + x
    o_ref[0] = out.astype(o_ref.dtype)


def linear_residual_kernel(x_ref, w_ref, b_ref, r_ref, o_ref):
    """out = residual + x @ W + b  (used for temporal_fc + its residual add)."""
    o_ref[...] = (r_ref[...]
                  + jnp.dot(x_ref[...], w_ref[...],
                            preferred_element_type=jnp.float32)
                  + b_ref[...]).astype(o_ref.dtype)


def mlp_block_kernel(x_ref, g_ref, b_ref, w1_ref, b1_ref, w2_ref, b2_ref, o_ref):
    """out = x + fc2(GELU(fc1(LayerNorm(x))))   (exact erf GELU like nn.GELU)."""
    x = x_ref[...]
    xn = _layernorm(x, g_ref[...], b_ref[...])
    h = jnp.dot(xn, w1_ref[...], preferred_element_type=jnp.float32) + b1_ref[...]
    h = jax.nn.gelu(h, approximate=False)
    y = jnp.dot(h, w2_ref[...], preferred_element_type=jnp.float32) + b2_ref[...]
    o_ref[...] = (x + y).astype(o_ref.dtype)


# ---------------------------------------------------------------------------
# pallas_call wrappers
# ---------------------------------------------------------------------------
def _cparams():
    # NOTE: at production shapes (embed_dim=768, mlp 3072) also set
    # vmem_limit_bytes (v6e) or single-buffer / column-tile the weights (v7x).
    return pltpu.CompilerParams(dimension_semantics=("parallel",))


def _row_tile(m, cap=512):
    """Largest divisor of m that is <= cap, preferring multiples of 8."""
    divs = [d for d in range(1, min(m, cap) + 1) if m % d == 0]
    mult8 = [d for d in divs if d % 8 == 0]
    return max(mult8) if mult8 else max(divs)


def patch_embed_pallas(patches, wp, bp, emb):
    """patches: (F, N, Cp) with F = B*T;  emb: (T, N, C) combined pos+time."""
    F, N, Cp = patches.shape
    C = wp.shape[1]
    T = emb.shape[0]
    grid_spec = pltpu.PrefetchScalarGridSpec(
        num_scalar_prefetch=0, grid=(F,),
        in_specs=[
            pl.BlockSpec((1, N, Cp), lambda f: (f, 0, 0)),
            pl.BlockSpec((Cp, C), lambda f: (0, 0)),
            pl.BlockSpec((1, C), lambda f: (0, 0)),
            pl.BlockSpec((1, N, C), lambda f: (f % T, 0, 0)),
        ],
        out_specs=pl.BlockSpec((1, N, C), lambda f: (f, 0, 0)),
    )
    return pl.pallas_call(
        patch_embed_kernel,
        out_shape=jax.ShapeDtypeStruct((F, N, C), jnp.float32),
        grid_spec=grid_spec, compiler_params=_cparams(),
    )(patches, wp, bp, emb)


def attention_pallas(x, p, *, num_heads, add_residual):
    """x: (S, N, C) — S independent sequences (temporal or spatial)."""
    S, N, C = x.shape
    hd = C // num_heads
    scale = hd ** -0.5
    kernel = functools.partial(attention_kernel, num_heads=num_heads,
                               scale=scale, add_residual=add_residual)
    grid_spec = pltpu.PrefetchScalarGridSpec(
        num_scalar_prefetch=0, grid=(S,),
        in_specs=[
            pl.BlockSpec((1, N, C), lambda s: (s, 0, 0)),
            pl.BlockSpec((1, C), lambda s: (0, 0)),
            pl.BlockSpec((1, C), lambda s: (0, 0)),
            pl.BlockSpec((C, 3 * C), lambda s: (0, 0)),
            pl.BlockSpec((1, 3 * C), lambda s: (0, 0)),
            pl.BlockSpec((C, C), lambda s: (0, 0)),
            pl.BlockSpec((1, C), lambda s: (0, 0)),
        ],
        out_specs=pl.BlockSpec((1, N, C), lambda s: (s, 0, 0)),
    )
    flops = int(S * (2 * N * C * 3 * C + num_heads * 4 * N * N * hd + 2 * N * C * C))
    cost = pl.CostEstimate(
        flops=flops,
        transcendentals=int(S * num_heads * N * N),
        bytes_accessed=int(4 * (2 * S * N * C + 4 * C * C + 6 * C)))
    return pl.pallas_call(
        kernel,
        out_shape=jax.ShapeDtypeStruct((S, N, C), jnp.float32),
        grid_spec=grid_spec, compiler_params=_cparams(), cost_estimate=cost,
    )(x, p["ln_g"], p["ln_b"], p["wqkv"], p["bqkv"], p["wproj"], p["bproj"])


def linear_residual_pallas(x, w, b, residual, tm):
    M, Cin = x.shape
    Cout = w.shape[1]
    assert M % tm == 0
    grid_spec = pltpu.PrefetchScalarGridSpec(
        num_scalar_prefetch=0, grid=(M // tm,),
        in_specs=[
            pl.BlockSpec((tm, Cin), lambda i: (i, 0)),
            pl.BlockSpec((Cin, Cout), lambda i: (0, 0)),
            pl.BlockSpec((1, Cout), lambda i: (0, 0)),
            pl.BlockSpec((tm, Cout), lambda i: (i, 0)),
        ],
        out_specs=pl.BlockSpec((tm, Cout), lambda i: (i, 0)),
    )
    return pl.pallas_call(
        linear_residual_kernel,
        out_shape=jax.ShapeDtypeStruct((M, Cout), jnp.float32),
        grid_spec=grid_spec, compiler_params=_cparams(),
    )(x, w, b, residual)


def mlp_block_pallas(x, p, tm):
    M, C = x.shape
    H = p["w1"].shape[1]
    assert M % tm == 0
    grid_spec = pltpu.PrefetchScalarGridSpec(
        num_scalar_prefetch=0, grid=(M // tm,),
        in_specs=[
            pl.BlockSpec((tm, C), lambda i: (i, 0)),
            pl.BlockSpec((1, C), lambda i: (0, 0)),
            pl.BlockSpec((1, C), lambda i: (0, 0)),
            pl.BlockSpec((C, H), lambda i: (0, 0)),
            pl.BlockSpec((1, H), lambda i: (0, 0)),
            pl.BlockSpec((H, C), lambda i: (0, 0)),
            pl.BlockSpec((1, C), lambda i: (0, 0)),
        ],
        out_specs=pl.BlockSpec((tm, C), lambda i: (i, 0)),
    )
    cost = pl.CostEstimate(
        flops=int(4 * M * C * H),
        transcendentals=int(M * H),
        bytes_accessed=int(4 * (2 * M * C + 2 * C * H + H + 3 * C)))
    return pl.pallas_call(
        mlp_block_kernel,
        out_shape=jax.ShapeDtypeStruct((M, C), jnp.float32),
        grid_spec=grid_spec, compiler_params=_cparams(), cost_estimate=cost,
    )(x, p["ln_g"], p["ln_b"], p["w1"], p["b1"], p["w2"], p["b2"])


# ---------------------------------------------------------------------------
# Model forward (wrapper: layout plumbing only; compute lives in the kernels)
# ---------------------------------------------------------------------------
def _extract_patches(x, ps):
    """x: (B, Cin, T, H, W) -> (B*T, N, Cin*ps*ps), same layout as the stride-ps conv."""
    B, Cin, T, H, W = x.shape
    Hp, Wp = H // ps, W // ps
    xf = x.transpose(0, 2, 1, 3, 4).reshape(B * T, Cin, H, W)          # 'b c t h w -> (b t) c h w'
    p = xf.reshape(B * T, Cin, Hp, ps, Wp, ps)
    p = p.transpose(0, 2, 4, 1, 3, 5).reshape(B * T, Hp * Wp, Cin * ps * ps)
    return p


def block_forward_pallas(x, blk, *, B, T, N, num_heads, tm):
    """One divided space-time Block; x: (B, N*T, C), token order (n major, t minor)."""
    C = x.shape[-1]
    # temporal attention: 'b (n t) m -> (b n) t m'
    xt_seq = x.reshape(B * N, T, C)
    res_t = attention_pallas(xt_seq, blk["tattn"], num_heads=num_heads,
                             add_residual=False)
    # xt = x + temporal_fc(res_temporal)
    xt = linear_residual_pallas(res_t.reshape(B * N * T, C),
                                blk["tfc_w"], blk["tfc_b"],
                                x.reshape(B * N * T, C), tm)
    xt = xt.reshape(B, N, T, C)
    # spatial attention: 'b (n t) m -> (b t) n m', residual fused in-kernel
    xs_seq = xt.transpose(0, 2, 1, 3).reshape(B * T, N, C)
    xs_out = attention_pallas(xs_seq, blk["sattn"], num_heads=num_heads,
                              add_residual=True)
    x2 = xs_out.reshape(B, T, N, C).transpose(0, 2, 1, 3).reshape(B * N * T, C)
    # MLP with fused LayerNorm + residual
    y = mlp_block_pallas(x2, blk["mlp"], tm)
    return y.reshape(B, N * T, C)


def timesformer_forward(x, params, *, patch_size, num_heads):
    """x: (B, Cin, T, H, W) float32 -> (B, N*T, C) features (use_head=False)."""
    B, Cin, T, H, W = x.shape
    Hp, Wp = H // patch_size, W // patch_size
    N = Hp * Wp
    C = params["patch_w"].shape[1]
    patches = _extract_patches(x, patch_size)
    # Hoisted weight-only precompute: combined pos+time embedding table (T, N, C).
    # (nearest-interp of pos_embed back to the same grid and T == num_frames make
    #  the reference's embedding adds exactly these plain adds.)
    emb = (params["pos_embed"][0, 1:, :][None, :, :]
           + params["time_embed"][0][:, None, :])
    tok = patch_embed_pallas(patches, params["patch_w"], params["patch_b"], emb)
    xt = tok.reshape(B, T, N, C).transpose(0, 2, 1, 3).reshape(B, N * T, C)
    tm = _row_tile(B * N * T)
    for blk in params["blocks"]:
        xt = block_forward_pallas(xt, blk, B=B, T=T, N=N,
                                  num_heads=num_heads, tm=tm)
    return xt


# ---------------------------------------------------------------------------
# Synthetic parameters + pure-JAX reference
# ---------------------------------------------------------------------------
def init_params(key, *, in_chans, patch_size, embed_dim, depth, num_heads,
                mlp_ratio, num_patches, num_frames):
    hidden = int(embed_dim * mlp_ratio)
    cp = in_chans * patch_size * patch_size
    state = {"key": key}

    def nrm(shape, std=0.02):
        state["key"], sub = jax.random.split(state["key"])
        return jax.random.normal(sub, shape, jnp.float32) * std

    def attn_p():
        return {"ln_g": 1.0 + nrm((1, embed_dim), 0.05),
                "ln_b": nrm((1, embed_dim)),
                "wqkv": nrm((embed_dim, 3 * embed_dim)),
                "bqkv": nrm((1, 3 * embed_dim)),
                "wproj": nrm((embed_dim, embed_dim)),
                "bproj": nrm((1, embed_dim))}

    params = {"patch_w": nrm((cp, embed_dim)),        # conv kernel flattened (c,dy,dx) -> (Cp, C)
              "patch_b": nrm((1, embed_dim)),
              "pos_embed": nrm((1, num_patches + 1, embed_dim)),
              "time_embed": nrm((1, num_frames, embed_dim)),
              "blocks": []}
    for _ in range(depth):
        params["blocks"].append({
            "tattn": attn_p(),
            "tfc_w": nrm((embed_dim, embed_dim)),
            "tfc_b": nrm((1, embed_dim)),
            "sattn": attn_p(),
            "mlp": {"ln_g": 1.0 + nrm((1, embed_dim), 0.05),
                    "ln_b": nrm((1, embed_dim)),
                    "w1": nrm((embed_dim, hidden)),
                    "b1": nrm((1, hidden)),
                    "w2": nrm((hidden, embed_dim)),
                    "b2": nrm((1, embed_dim))}})
    return params


def _ref_ln(x, g, b):
    mu = x.mean(-1, keepdims=True)
    var = ((x - mu) ** 2).mean(-1, keepdims=True)
    return (x - mu) / jnp.sqrt(var + LN_EPS) * g + b


def _ref_attention(x, p, num_heads):
    S, N, C = x.shape
    hd = C // num_heads
    qkv = x @ p["wqkv"] + p["bqkv"]
    qkv = qkv.reshape(S, N, 3, num_heads, hd).transpose(2, 0, 3, 1, 4)
    q, k, v = qkv[0], qkv[1], qkv[2]                       # (S, nh, N, hd)
    attn = jax.nn.softmax((q @ k.transpose(0, 1, 3, 2)) * hd ** -0.5, axis=-1)
    o = (attn @ v).transpose(0, 2, 1, 3).reshape(S, N, C)
    return o @ p["wproj"] + p["bproj"]


def _ref_block(x, blk, B, T, N, num_heads):
    C = x.shape[-1]
    xt = x.reshape(B * N, T, C)
    res_t = _ref_attention(_ref_ln(xt, blk["tattn"]["ln_g"], blk["tattn"]["ln_b"]),
                           blk["tattn"], num_heads).reshape(B, N * T, C)
    xt = x + (res_t @ blk["tfc_w"] + blk["tfc_b"])
    xs = xt.reshape(B, N, T, C).transpose(0, 2, 1, 3).reshape(B * T, N, C)
    res_s = _ref_attention(_ref_ln(xs, blk["sattn"]["ln_g"], blk["sattn"]["ln_b"]),
                           blk["sattn"], num_heads)
    res_s = res_s.reshape(B, T, N, C).transpose(0, 2, 1, 3).reshape(B, N * T, C)
    x2 = xt + res_s
    m = blk["mlp"]
    h = jax.nn.gelu(_ref_ln(x2, m["ln_g"], m["ln_b"]) @ m["w1"] + m["b1"],
                    approximate=False)
    return x2 + (h @ m["w2"] + m["b2"])


def timesformer_reference(x, params, *, patch_size, num_heads):
    B, Cin, T, H, W = x.shape
    Hp, Wp = H // patch_size, W // patch_size
    N = Hp * Wp
    C = params["patch_w"].shape[1]
    tok = _extract_patches(x, patch_size) @ params["patch_w"] + params["patch_b"]
    tok = tok + params["pos_embed"][:, 1:, :]
    xt = tok.reshape(B, T, N, C).transpose(0, 2, 1, 3)     # (B, N, T, C)
    xt = (xt + params["time_embed"][:, None, :, :]).reshape(B, N * T, C)
    for blk in params["blocks"]:
        xt = _ref_block(xt, blk, B, T, N, num_heads)
    return xt


# ---------------------------------------------------------------------------
if __name__ == "__main__":
    # Small shapes consistent with the module (downscaled TimeSformer):
    B, Cin, T = 2, 3, 2
    img_size, patch_size = 32, 16
    embed_dim, depth, num_heads, mlp_ratio = 128, 2, 4, 4.0
    Hp = Wp = img_size // patch_size
    num_patches = Hp * Wp

    key = jax.random.PRNGKey(0)
    kx, kp = jax.random.split(key)
    x = jax.random.normal(kx, (B, Cin, T, img_size, img_size), jnp.float32)
    params = init_params(kp, in_chans=Cin, patch_size=patch_size,
                         embed_dim=embed_dim, depth=depth, num_heads=num_heads,
                         mlp_ratio=mlp_ratio, num_patches=num_patches,
                         num_frames=T)

    out = timesformer_forward(x, params, patch_size=patch_size, num_heads=num_heads)
    out = jax.block_until_ready(out)

    ref = timesformer_reference(x, params, patch_size=patch_size, num_heads=num_heads)
    assert out.shape == (B, num_patches * T, embed_dim)
    err = float(jnp.max(jnp.abs(out - ref)))
    assert jnp.allclose(out, ref, atol=2e-4, rtol=2e-4), f"mismatch vs reference, max_abs_err={err}"
    print("KERNEL_OK")
</pallas_src>

<mosaic_0001>
module attributes {stable_mosaic.version = 11 : i64} {
  func.func @patch_embed_kernel(%arg0: i32, %arg1: memref<1x4x768xf32, #tpu.memory_space<vmem>>, %arg2: memref<768x128xf32, #tpu.memory_space<vmem>>, %arg3: memref<1x128xf32, #tpu.memory_space<vmem>>, %arg4: memref<1x4x128xf32, #tpu.memory_space<vmem>>, %arg5: memref<1x4x128xf32, #tpu.memory_space<vmem>>) attributes {dimension_semantics = [#tpu.dimension_semantics<parallel>], iteration_bounds = array<i64: 4>, scalar_prefetch = 0 : i64, scratch_operands = 0 : i64, tpu.core_type = #tpu.core_type<tc>, window_params = [{transform_indices = @transform_0, window_bounds = array<i64: 1, 4, 768>}, {pipeline_mode = #tpu.pipeline_mode<synchronous>, transform_indices = @transform_1, window_bounds = array<i64: 768, 128>}, {pipeline_mode = #tpu.pipeline_mode<synchronous>, transform_indices = @transform_2, window_bounds = array<i64: 1, 128>}, {transform_indices = @transform_3, window_bounds = array<i64: 1, 4, 128>}, {transform_indices = @transform_4, window_bounds = array<i64: 1, 4, 128>}]} {
    %c0 = arith.constant 0 : index
    %c0_0 = arith.constant 0 : index
    %c0_1 = arith.constant 0 : index
    %0 = vector.load %arg1[%c0, %c0_0, %c0_1] : memref<1x4x768xf32, #tpu.memory_space<vmem>>, vector<1x4x768xf32>
    %1 = vector.shape_cast %0 : vector<1x4x768xf32> to vector<4x768xf32>
    %c0_2 = arith.constant 0 : index
    %c0_3 = arith.constant 0 : index
    %2 = vector.load %arg2[%c0_2, %c0_3] : memref<768x128xf32, #tpu.memory_space<vmem>>, vector<768x128xf32>
    %cst = arith.constant dense<0.000000e+00> : vector<4x128xf32>
    %3 = tpu.matmul %1, %2, %cst {dimension_numbers = #tpu.dot_dimension_numbers<[1], [0], [0], [1], [0, 0, 1, 1], [], []>} : vector<4x768xf32>, vector<768x128xf32>, vector<4x128xf32> -> vector<4x128xf32>
    %c0_4 = arith.constant 0 : index
    %c0_5 = arith.constant 0 : index
    %4 = vector.load %arg3[%c0_4, %c0_5] : memref<1x128xf32, #tpu.memory_space<vmem>>, vector<1x128xf32>
    %5 = vector.broadcast %4 : vector<1x128xf32> to vector<4x128xf32>
    %6 = arith.addf %3, %5 : vector<4x128xf32>
    %c0_6 = arith.constant 0 : index
    %c0_7 = arith.constant 0 : index
    %c0_8 = arith.constant 0 : index
    %7 = vector.load %arg4[%c0_6, %c0_7, %c0_8] : memref<1x4x128xf32, #tpu.memory_space<vmem>>, vector<1x4x128xf32>
    %8 = vector.shape_cast %7 : vector<1x4x128xf32> to vector<4x128xf32>
    %9 = arith.addf %6, %8 : vector<4x128xf32>
    %c0_9 = arith.constant 0 : index
    %c0_10 = arith.constant 0 : index
    %c0_11 = arith.constant 0 : index
    %10 = vector.load %arg5[%c0_9, %c0_10, %c0_11] : memref<1x4x128xf32, #tpu.memory_space<vmem>>, vector<1x4x128xf32>
    %11 = vector.shape_cast %10 : vector<1x4x128xf32> to vector<4x128xf32>
    %12 = vector.shape_cast %9 : vector<4x128xf32> to vector<1x4x128xf32>
    tpu.vector_store %arg5[%c0_9, %c0_10, %c0_11], %12 {strides = array<i32>} : memref<1x4x128xf32, #tpu.memory_space<vmem>>, vector<1x4x128xf32>,
    return
  }
  func.func @transform_0(%arg0: i32) -> (i32, i32, i32) {
    %c0_i32 = arith.constant 0 : i32
    %c0_i32_0 = arith.constant 0 : i32
    %c0_i32_1 = arith.constant 0 : i32
    return %arg0, %c0_i32, %c0_i32_0 : i32, i32, i32
  }
  func.func @transform_1(%arg0: i32) -> (i32, i32) {
    %c0_i32 = arith.constant 0 : i32
    %c0_i32_0 = arith.constant 0 : i32
    %c0_i32_1 = arith.constant 0 : i32
    return %c0_i32, %c0_i32_0 : i32, i32
  }
  func.func @transform_2(%arg0: i32) -> (i32, i32) {
    %c0_i32 = arith.constant 0 : i32
    %c0_i32_0 = arith.constant 0 : i32
    %c0_i32_1 = arith.constant 0 : i32
    return %c0_i32, %c0_i32_0 : i32, i32
  }
  func.func @transform_3(%arg0: i32) -> (i32, i32, i32) {
    %c2_i32 = arith.constant 2 : i32
    %c0_i32 = arith.constant 0 : i32
    %0 = arith.cmpi eq, %c2_i32, %c0_i32 : i32
    %c1_i32 = arith.constant 1 : i32
    %1 = arith.select %0, %c1_i32, %c2_i32 : i32
    %2 = arith.remsi %arg0, %1 : i32
    %c0_i32_0 = arith.constant 0 : i32
    %3 = arith.cmpi ne, %2, %c0_i32_0 : i32
    %c0_i32_1 = arith.constant 0 : i32
    %4 = arith.cmpi slt, %2, %c0_i32_1 : i32
    %c0_i32_2 = arith.constant 0 : i32
    %5 = arith.cmpi slt, %1, %c0_i32_2 : i32
    %6 = arith.xori %4, %5 : i1
    %7 = arith.andi %6, %3 : i1
    %8 = arith.addi %2, %1 : i32
    %9 = arith.select %7, %8, %2 : i32
    %c0_i32_3 = arith.constant 0 : i32
    %c0_i32_4 = arith.constant 0 : i32
    %c0_i32_5 = arith.constant 0 : i32
    return %9, %c0_i32_3, %c0_i32_4 : i32, i32, i32
  }
  func.func @transform_4(%arg0: i32) -> (i32, i32, i32) {
    %c0_i32 = arith.constant 0 : i32
    %c0_i32_0 = arith.constant 0 : i32
    %c0_i32_1 = arith.constant 0 : i32
    return %arg0, %c0_i32, %c0_i32_0 : i32, i32, i32
  }
}

</mosaic_0001>

<bundles_post_ra>
// kernel: tpu_custom_call.1
= control target key start
LH: loop header
LB: loop body
LE: loop exit
PB: predicated region body
PF: predicated region fallthrough
CT: control target
= control target key end

     0   :  { %9 = vsyncpa [#allocation3], 0  ;;  %s1415_s0 = inlined_call_operand.hbm [shape: f32[4,4,768], index: 0, kind: input, shape index: {}]   ;;  %s1416_s1 = inlined_call_operand.hbm [shape: f32[768,128], index: 1, kind: input, shape index: {}]   ;;  %s1417_s2 = inlined_call_operand.vmem [shape: f32[1,128], index: 2, kind: input, shape index: {}]   ;;  %s1418_s3 = inlined_call_operand.vmem [shape: f32[2,4,128], index: 3, kind: input, shape index: {}]   ;;  %s1419_s4 = inlined_call_operand.hbm [shape: f32[4,4,128], index: 4, kind: output, shape index: {}]  }
   0x1   :  { %11 = vsyncpa [#allocation3 + $0x1], 0 }
   0x2   :  { %12 = vsyncpa [#allocation6], 0 }
   0x3   :  { %13 = vsyncpa [#allocation4], 0 }
   0x4   :  { %15 = vsyncpa [#allocation4 + $0x1], 0  ;;  %s1213_s15 = smov 0   ;;  %s1215_s16 = smov 0  }
   0x5   :  { %s1217_s17 = smov 0   ;;  %s1219_s18 = smov 0  }
   0x6 LB: > { %s1234_s19 = sadd.s32 4294967295, %s1181_s18   ;;  %s764_s20 = sadd.s32 4294967294, %s1181_s18   ;;  %s1181_s18 = sphi %s1219_s18, %s1438_s18   ;;  %s1177_s17 = sphi %s1217_s17, %s1437_s17   ;;  %s1173_s16 = sphi %s1215_s16, %s1436_s16   ;;  %s1169_s15 = sphi %s1213_s15, %s1435_s15  }
   0x7   : > { %p41_p0 = scmp.ne.s32.totalorder %s1173_s16, %s1169_s15  ;;  %p1420_p1 = scmp.eq.s32.totalorder %s1234_s19, 0 }
   0x8   : > { %p163_p3 = scmp.eq.s32.totalorder %s764_s20, 3  ;;  %p771_p5 = scmp.ge.s32.totalorder %s1181_s18, 1 }
   0x9   : > { %p1243_p4 = por %p1420_p1, %p41_p0  ;;  %p170_p7 = scmp.lt.s32.totalorder %s1181_s18, 5 }
   0xa   : > { %p1248_p6 = por %p163_p3, %p41_p0  ;;  %s1183_s24 = smov [#allocation5]  }
   0xb   : > { %s1423_s21 = scalar_select %p1243_p4, 1, 0 }
   0xc   : > { %s1424_s22 = scalar_select %p1248_p6, 1, 0 }
   0xd   : > { %p1253_p8 = pnand %p771_p5, %p170_p7  ;;  %s182_s25 = sshll.u32 %s1183_s24, 4  ;;  %s183_s25 = int_to_ptr.vmem [resolvable:$true] %s182_s25 }
   0xe   : > { %s1266_s27 = sadd.s32 1, %s1181_s18   ;;  %s28_s28 = sadd.s32 1, %s1177_s17 }
   0xf   : > { %s1425_s23 = scalar_select %p1253_p8, 1, 0 }
  0x10   : > { %p999_p9 = pneg %p1253_p8  ;;  %s25_s29 = ssub.s32 %s1181_s18, %s1266_s27 }
  0x11   : > { %s1053_s6 = scalar_lea.hbm %s1416_s1, 12288 }
  0x12   : > { %p1261_p10 = pnand %p999_p9, %p1420_p1  ;;  %p1054_p11 = scmp.ne.s32.totalorder %s1416_s1, %s1053_s6 }
  0x13   : > { %p1060_p3 = scmp.lt.u32.totalorder %s1053_s6, %s1416_s1 }
  0x14   : > { %p1055_p12 = pneg %p1261_p10 }
  0x16   : > { %p1056_p13 = pnand %p1055_p12, %p1054_p11 }
  0x18   : > { %p1057_p0 = pneg %p1056_p13 }
  0x1a   : > { %p1062_p5 = pnand %p1060_p3, %p1057_p0 }
  0x1c   : > { %1065 = shalt.err (!%p1062_p5)
}
  0x1d   : > { %s1066_s11 = scalar_lea.vmem %s183_s25, 12288  ;;  %p1074_p2 = scmp.lt.s32.totalorder %s183_s25, %s183_s25 }
  0x1e   : > { %p1067_p7 = scmp.ne.s32.totalorder %s183_s25, %s1066_s11  ;;  %p1075_p6 = scmp.lt.s32.totalorder %s1066_s11, %s1066_s11 }
  0x20   : > { %p1069_p9 = pnand %p1067_p7, %p1055_p12  ;;  %p1076_p4 = por %p1075_p6, %p1074_p2 }
  0x22   : > { %p1070_p1 = pneg %p1069_p9 }
  0x24   : > { %p1077_p8 = pnand %p1076_p4, %p1070_p1 }
  0x26   : > { %1080 = shalt.err (!%p1077_p8)
}
  0x27   : > { %s1184_s12 = smov 128   ;;  %s1185_s13 = smov 8  }
  0x28   : > { %1002 = dma.hbm_to_vmem [thread:$0]  (!%p1261_p10), %s1416_s1, 12288, %s183_s25, [#allocation6], %s1184_s12, %s1184_s12, %s1185_s13  }
  0x29   : > { %p26_p11 = scmp.eq.s32.totalorder %s25_s29, 0  ;;  %p35_p2 = scmp.ne.s32.totalorder %s1177_s17, %s1173_s16 }
  0x2a   : > { %p36_p1 = scmp.eq.s32.totalorder %s1181_s18, 0  ;;  %p1012_p4 = scmp.lt.s32.totalorder %s1181_s18, 4 }
  0x2b   : > { %s1292_s24 = scalar_select %p26_p11, %s1177_s17, %s28_s28  }
  0x2c   : > { %p37_p6 = por %p36_p1, %p35_p2  ;;  %p1427_p8 = scmp.eq.s32.totalorder %s1234_s19, 3 }
  0x2d   : > { %s199_s5 = sand.u32 1, %s1177_s17   ;;  %s989_s6 = smul.u32 384, %s1181_s18 }
  0x2e   : > { %p1296_p12 = por %p1427_p8, %p35_p2  ;;  %s988_s7 = smul.u32 24, %s199_s5 }
  0x2f   : > { %p1302_p13 = pnand %p1012_p4, %p37_p6  ;;  %s1309_s28 = scalar_lea.hbm %s1415_s0, %s989_s6 }
  0x30   : > { %s203_s8 = scalar_lea.vmem [#allocation2], %s988_s7  ;;  %s200_s10 = scalar_lea.sflag [#allocation3], %s199_s5 }
  0x31   : > { %s211_s9 = sshll.u32 %s203_s8, 4  ;;  %s1081_s11 = scalar_lea.hbm %s1309_s28, 384  ;;  %s1311_s9 = int_to_ptr.vmem [resolvable:$true] %s211_s9 }
  0x32   : > { %p1082_p10 = scmp.ne.s32.totalorder %s1309_s28, %s1081_s11  ;;  %p1083_p0 = pneg %p1302_p13 }
  0x33   : > { %s1086_s14 = scalar_lea.hbm %s1415_s0, 1536  ;;  %p1087_p7 = scmp.lt.u32.totalorder %s1309_s28, %s1415_s0 }
  0x34   : > { %p1084_p3 = pnand %p1083_p0, %p1082_p10  ;;  %p1088_p9 = scmp.lt.u32.totalorder %s1086_s14, %s1081_s11 }
  0x35   : > { %p1090_p2 = scmp.lt.u32.totalorder %s1081_s11, %s1309_s28 }
  0x36   : > { %p1085_p5 = pneg %p1084_p3  ;;  %p1089_p11 = por %p1088_p9, %p1087_p7 }
  0x38   : > { %p1091_p1 = por %p1090_p2, %p1089_p11 }
  0x3a   : > { %p1092_p4 = pnand %p1091_p1, %p1085_p5 }
  0x3c   : > { %1095 = shalt.err (!%p1092_p4)
}
  0x3d   : > { %s1096_s5 = scalar_lea.vmem %s1311_s9, 384  ;;  %s1186_s7 = smov [#allocation2]  }
  0x3e   : > { %p1097_p6 = scmp.ne.s32.totalorder %s1311_s9, %s1096_s5  ;;  %s1101_s25 = sshll.u32 %s1186_s7, 4  ;;  %s1102_s25 = int_to_ptr.vmem [resolvable:$false] %s1101_s25 }
  0x3f   : > { %s1103_s29 = scalar_lea.vmem %s1102_s25, 768  ;;  %p1104_p3 = scmp.lt.s32.totalorder %s1311_s9, %s1102_s25 }
  0x40   : > { %p1099_p8 = pnand %p1097_p6, %p1083_p0  ;;  %p1105_p7 = scmp.lt.s32.totalorder %s1103_s29, %s1096_s5 }
  0x42   : > { %p1100_p10 = pneg %p1099_p8  ;;  %p1106_p9 = por %p1105_p7, %p1104_p3 }
  0x44   : > { %p1107_p11 = pnand %p1106_p9, %p1100_p10 }
  0x46   : > { %1110 = shalt.err (!%p1107_p11)
}
  0x47   : > { %1006 = dma.hbm_to_vmem [thread:$0]  (!%p1302_p13), %s1309_s28, 384, %s1311_s9, %s200_s10  }
  0x48   : > { %p1430_p5 = scmp.ne.s32.totalorder %s1425_s23, 0 }
  0x49   : > { %s1341_s8 = sand.u32 (!%p1430_p5), 1, %s1173_s16   ;;  %p1431_p0 = scmp.ne.s32.totalorder (!%p1430_p5), %s1423_s21, 0 }
  0x4a   : > { %251 = sbr.rel (%p1430_p5) target bundleno = 385 (0x181), region = 36  ;;  %s254_s12 = scalar_lea.sflag (!%p1430_p5), [#allocation3], %s1341_s8 }
  0x4b   : > { %s990_s11 = smul.u32 (!%p1430_p5), 24, %s1341_s8 }
  0x4d   : > { %s1345_s13 = scalar_lea.vmem (!%p1430_p5), [#allocation2], %s990_s11 }
  0x51   : > { %1156 = dma.done.wait (%p1431_p0), %s254_s12, 384  }
  0x52   : > { %1158 = vsyncadd (%p1431_p0), %s254_s12, 4294966912  ;;  %p1432_p13 = scmp.eq.s32.totalorder %s1234_s19, 0 }
  0x54   : > { %1160 = dma.done.wait (%p1432_p13), [#allocation6], 12288   ;;  %p1433_p2 = pmov %p1432_p13 }
  0x55   : > { %v349_v0 = vld [vmem:[#allocation5 + $0x80] sm:$0xff]  ;;  %v350_v1 = vld [vmem:[#allocation5 + $0x88] sm:$0xff]  ;;  %v351_v11 = vld [vmem:[#allocation5 + $0x90] sm:$0xff]  ;;  %s303_s21 = ssub.s32 0, %s1234_s19  ;;  %p302_p1 = scmp.lt.s32.totalorder %s1234_s19, 0 }
  0x56   : > { %1162 = vsyncadd (%p1433_p2), [#allocation6], 4294955008  ;;  %v333_v2 = vld [vmem:[#allocation5] sm:$0xff]  ;;  %v892_v3 = vpack.c.bf16 %v350_v1, %v349_v0  ;;  %v334_v4 = vld [vmem:[#allocation5 + $0x8] sm:$0xff]  ;;  %s778_s23 = smin.u32 %s1234_s19, %s303_s21  ;;  %s777_s6 = sshll.u32 %s1341_s8, 2 }
  0x57   : > { %v381_v5 = vld [vmem:[#allocation5 + $0x180] sm:$0xff]  ;;  %v382_v6 = vld [vmem:[#allocation5 + $0x188] sm:$0xff]  ;;  %v894_v7 = vpack.c.bf16 %v334_v4, %v333_v2  ;;  %v352_v13 = vld [vmem:[#allocation5 + $0x98] sm:$0xff]  ;;  %s305_s9 = sand.u32 1, %s778_s23   ;;  %s784_s29 = sshll.u32 %s1234_s19, 6 }
  0x58   : > { %v924_v8 = vpack.c.bf16 %v382_v6, %v381_v5  ;;  %v365_v9 = vld [vmem:[#allocation5 + $0x100] sm:$0xff]  ;;  %v366_v10 = vld [vmem:[#allocation5 + $0x108] sm:$0xff]  ;;  %893 = vmatprep.subr.bf16.mxu0 %v892_v3  ;;  %v335_v14 = vld [vmem:[#allocation5 + $0x10] sm:$0xff]  ;;  %v896_v16 = vpack.c.bf16 %v352_v13, %v351_v11  ;;  %s306_s10 = ssub.s32 0, %s305_s9  ;;  %s301_s11 = scalar_lea.vmem [#allocation7], %s777_s6 }
  0x59   : > { %v926_v12 = vpack.c.bf16 %v366_v10, %v365_v9  ;;  %v336_v15 = vld [vmem:[#allocation5 + $0x18] sm:$0xff]  ;;  %895 = vmatpush3.bf16.msra.mxu0 %v894_v7  ;;  %v383_v18 = vld [vmem:[#allocation5 + $0x190] sm:$0xff]  ;;  %v353_v23 = vld [vmem:[#allocation5 + $0xa0] sm:$0xff]  ;;  %s1440_s10 = smov (!%p302_p1, %s306_s10), %s305_s9  ;;  %s672_s12 = sshll.u32 %s301_s11, 4  ;;  %s1374_s12 = int_to_ptr.vmem [resolvable:$true] %s672_s12 }
  0x5a   : > { %925 = vmatprep.subr.bf16.mxu1 %v924_v8  ;;  %v898_v17 = vpack.c.bf16 %v336_v15, %v335_v14  ;;  %v384_v19 = vld [vmem:[#allocation5 + $0x198] sm:$0xff]  ;;  %v367_v20 = vld [vmem:[#allocation5 + $0x110] sm:$0xff]  ;;  %v354_v24 = vld [vmem:[#allocation5 + $0xa8] sm:$0xff]  ;;  %897 = vmatprep.subr.bf16.mxu0 %v896_v16  ;;  %p780_p4 = scmp.lt.s32.totalorder %s1440_s10, 0  ;;  %s312_s14 = sadd.s32 2, %s1440_s10 }
  0x5b   : > { %927 = vmatpush3.bf16.msra.mxu1 %v926_v12  ;;  %v928_v21 = vpack.c.bf16 %v384_v19, %v383_v18  ;;  %v368_v22 = vld [vmem:[#allocation5 + $0x118] sm:$0xff]  ;;  %v900_v26 = vpack.c.bf16 %v354_v24, %v353_v23  ;;  %v337_v27 = vld [vmem:[#allocation5 + $0x20] sm:$0xff]  ;;  %v338_v28 = vld [vmem:[#allocation5 + $0x28] sm:$0xff]  ;;  %s1372_s23 = scalar_lea.hbm %s1419_s4, %s784_s29  ;;  %s659_s26 = scalar_lea.sflag [#allocation4], %s1341_s8 }
  0x5c   : > { %v930_v25 = vpack.c.bf16 %v368_v22, %v367_v20  ;;  %v385_v29 = vld [vmem:[#allocation5 + $0x1a0] sm:$0xff]  ;;  %v386_v30 = vld [vmem:[#allocation5 + $0x1a8] sm:$0xff]  ;;  %v902_v33 = vpack.c.bf16 %v338_v28, %v337_v27  ;;  %v355_v35 = vld [vmem:[#allocation5 + $0xb0] sm:$0xff]  ;;  %s1442_s14 = smov (!%p780_p4, %s312_s14), %s1440_s10  ;;  %s1111_s28 = scalar_lea.vmem %s1374_s12, 64 }
  0x5d   : > { %929 = vmatprep.subr.bf16.mxu1 %v928_v21  ;;  %v369_v31 = vld [vmem:[#allocation5 + $0x120] sm:$0xff]  ;;  %v370_v32 = vld [vmem:[#allocation5 + $0x128] sm:$0xff]  ;;  %899 = vmatpush3.bf16.msra.mxu0 %v898_v17  ;;  %v932_v34 = vpack.c.bf16 %v386_v30, %v385_v29  ;;  %v356_v36 = vld [vmem:[#allocation5 + $0xb8] sm:$0xff]  ;;  %p314_p6 = scmp.lt.s32.totalorder %s1442_s14, 1  ;;  %p1112_p8 = scmp.ne.s32.totalorder %s1374_s12, %s1111_s28 }
  0x5e   : > { %v339_v37 = vld [vmem:[#allocation5 + $0x30] sm:$0xff]  ;;  %901 = vmatprep.subr.bf16.mxu0 %v900_v26  ;;  %v934_v38 = vpack.c.bf16 %v370_v32, %v369_v31  ;;  %v904_v39 = vpack.c.bf16 %v356_v36, %v355_v35  ;;  %v340_v40 = vld [vmem:[#allocation5 + $0x38] sm:$0xff]  ;;  %v357_v46 = vld [vmem:[#allocation5 + $0xc0] sm:$0xff]  ;;  %s1187_s19 = smov [#allocation7]  }
  0x5f   : > { %931 = vmatpush3.bf16.msra.mxu1 %v930_v25  ;;  %v387_v41 = vld [vmem:[#allocation5 + $0x1b0] sm:$0xff]  ;;  %v388_v42 = vld [vmem:[#allocation5 + $0x1b8] sm:$0xff]  ;;  %v358_v47 = vld [vmem:[#allocation5 + $0xc8] sm:$0xff]  ;;  %v906_v48 = vpack.c.bf16 %v340_v40, %v339_v37  ;;  %s1444_s14 = smov (!%p314_p6, %s1442_s14), 1  ;;  %p1113_p10 = pnand %p1112_p8, %p1296_p12 }
  0x60   : > { %933 = vmatprep.subr.bf16.mxu1 %v932_v34  ;;  %v936_v43 = vpack.c.bf16 %v388_v42, %v387_v41  ;;  %v371_v44 = vld [vmem:[#allocation5 + $0x130] sm:$0xff]  ;;  %v372_v45 = vld [vmem:[#allocation5 + $0x138] sm:$0xff]  ;;  %v389_v49 = vld [vmem:[#allocation5 + $0x1c0] sm:$0xff]  ;;  %v908_v52 = vpack.c.bf16 %v358_v47, %v357_v46  ;;  %s781_s20 = sshll.u32 %s1444_s14, 2  ;;  %s1115_s9 = sshll.u32 %s1187_s19, 4  ;;  %s1116_s9 = int_to_ptr.vmem [resolvable:$false] %s1115_s9 }
  0x61   : > { %903 = vmatpush3.bf16.msra.mxu0 %v902_v33  ;;  %v390_v50 = vld [vmem:[#allocation5 + $0x1c8] sm:$0xff]  ;;  %v938_v51 = vpack.c.bf16 %v372_v45, %v371_v44  ;;  %v341_v53 = vld [vmem:[#allocation5 + $0x40] sm:$0xff]  ;;  %v359_v58 = vld [vmem:[#allocation5 + $0xd0] sm:$0xff]  ;;  %s317_s25 = scalar_lea.vmem %s1418_s3, %s781_s20  ;;  %p1114_p3 = pneg %p1113_p10 }
  0x62   : > { %905 = vmatprep.subr.bf16.mxu0 %v904_v39  ;;  %v342_v54 = vld [vmem:[#allocation5 + $0x48] sm:$0xff]  ;;  %v373_v55 = vld [vmem:[#allocation5 + $0x140] sm:$0xff]  ;;  %v940_v56 = vpack.c.bf16 %v390_v50, %v389_v49  ;;  %v360_v59 = vld [vmem:[#allocation5 + $0xd8] sm:$0xff]  ;;  %s1117_s10 = scalar_lea.vmem %s1116_s9, 128  ;;  %p1118_p7 = scmp.lt.s32.totalorder %s1374_s12, %s1116_s9 }
  0x63   : > { %935 = vmatpush3.bf16.msra.mxu1 %v934_v38  ;;  %v374_v57 = vld [vmem:[#allocation5 + $0x148] sm:$0xff]  ;;  %v391_v60 = vld [vmem:[#allocation5 + $0x1d0] sm:$0xff]  ;;  %v392_v61 = vld [vmem:[#allocation5 + $0x1d8] sm:$0xff]  ;;  %v910_v62 = vpack.c.bf16 %v342_v54, %v341_v53  ;;  %v912_v0 = vpack.c.bf16 %v360_v59, %v359_v58  ;;  %p1119_p9 = scmp.lt.s32.totalorder %s1117_s10, %s1111_s28 }
  0x64   : > { %937 = vmatprep.subr.bf16.mxu1 %v936_v43  ;;  %v942_v63 = vpack.c.bf16 %v374_v57, %v373_v55  ;;  %v343_v1 = vld [vmem:[#allocation5 + $0x50] sm:$0xff]  ;;  %v344_v2 = vld [vmem:[#allocation5 + $0x58] sm:$0xff]  ;;  %v944_v4 = vpack.c.bf16 %v392_v61, %v391_v60  ;;  %v361_v6 = vld [vmem:[#allocation5 + $0xe0] sm:$0xff] }
  0x65   : > { %907 = vmatpush3.bf16.msra.mxu0 %v906_v48  ;;  %v375_v3 = vld [vmem:[#allocation5 + $0x150] sm:$0xff]  ;;  %v376_v5 = vld [vmem:[#allocation5 + $0x158] sm:$0xff]  ;;  %v362_v7 = vld [vmem:[#allocation5 + $0xe8] sm:$0xff]  ;;  %v914_v10 = vpack.c.bf16 %v344_v2, %v343_v1  ;;  %p1120_p11 = por %p1119_p9, %p1118_p7 }
  0x66   : > { %909 = vmatprep.subr.bf16.mxu0 %v908_v52  ;;  %v393_v8 = vld [vmem:[#allocation5 + $0x1e0] sm:$0xff]  ;;  %v394_v9 = vld [vmem:[#allocation5 + $0x1e8] sm:$0xff]  ;;  %v946_v13 = vpack.c.bf16 %v376_v5, %v375_v3  ;;  %v916_v14 = vpack.c.bf16 %v362_v7, %v361_v6  ;;  %v363_v20 = vld [vmem:[#allocation5 + $0xf0] sm:$0xff] }
  0x67   : > { %939 = vmatpush3.bf16.msra.mxu1 %v938_v51  ;;  %v345_v11 = vld [vmem:[#allocation5 + $0x60] sm:$0xff]  ;;  %v330_v12 = vld [vmem:[%s1345_s13] sm:$0xff]  ;;  %v948_v19 = vpack.c.bf16 %v394_v9, %v393_v8  ;;  %v364_v21 = vld [vmem:[#allocation5 + $0xf8] sm:$0xff]  ;;  %p1121_p5 = pnand %p1120_p11, %p1114_p3 }
  0x68   : > { %941 = vmatprep.subr.bf16.mxu1 %v940_v56  ;;  %v346_v15 = vld [vmem:[#allocation5 + $0x68] sm:$0xff]  ;;  %v377_v16 = vld [vmem:[#allocation5 + $0x160] sm:$0xff]  ;;  %v439_v18 = vcombine.high %v330_v12, %v330_v12  ;;  %v331_v22 = vld [vmem:[%s1345_s13 + $0x8] sm:$0xff]  ;;  %v920_v28 = vpack.c.bf16 %v364_v21, %v363_v20 }
  0x69   : > { %911 = vmatpush3.bf16.msra.mxu0 %v910_v62  ;;  %v378_v17 = vld [vmem:[#allocation5 + $0x168] sm:$0xff]  ;;  %v395_v23 = vld [vmem:[#allocation5 + $0x1f0] sm:$0xff]  ;;  %v396_v24 = vld [vmem:[#allocation5 + $0x1f8] sm:$0xff]  ;;  %v440_v25 = vcombine.high %v331_v22, %v331_v22  ;;  %v918_v26 = vpack.c.bf16 %v346_v15, %v345_v11 }
  0x6a   : > { %913 = vmatprep.subr.bf16.mxu0 %v912_v0  ;;  %509 = vmatprep.mubr.f32.mxu0 %v439_v18  ;;  %v950_v27 = vpack.c.bf16 %v378_v17, %v377_v16  ;;  %v347_v29 = vld [vmem:[#allocation5 + $0x70] sm:$0xff]  ;;  %v348_v30 = vld [vmem:[#allocation5 + $0x78] sm:$0xff]  ;;  %v952_v32 = vpack.c.bf16 %v396_v24, %v395_v23  ;;  %v413_v34 = vld [vmem:[#allocation5 + $0x280] sm:$0xff] }
  0x6b   : > { %943 = vmatpush3.bf16.msra.mxu1 %v942_v63  ;;  %v379_v31 = vld [vmem:[#allocation5 + $0x170] sm:$0xff]  ;;  %v380_v33 = vld [vmem:[#allocation5 + $0x178] sm:$0xff]  ;;  %v414_v35 = vld [vmem:[#allocation5 + $0x288] sm:$0xff]  ;;  %579 = vmatprep.mubr.f32.mxu1 %v440_v25  ;;  %v922_v36 = vpack.c.bf16 %v348_v30, %v347_v29 }
  0x6c   : > { %945 = vmatprep.subr.bf16.mxu1 %v944_v4  ;;  %v954_v37 = vpack.c.bf16 %v380_v33, %v379_v31  ;;  %v956_v38 = vpack.c.bf16 %v414_v35, %v413_v34  ;;  %v397_v39 = vld [vmem:[#allocation5 + $0x200] sm:$0xff]  ;;  %v398_v40 = vld [vmem:[#allocation5 + $0x208] sm:$0xff]  ;;  %v415_v41 = vld [vmem:[#allocation5 + $0x290] sm:$0xff] }
  0x6d   : > { %915 = vmatpush3.bf16.msra.mxu0 %v914_v10  ;;  %v416_v42 = vld [vmem:[#allocation5 + $0x298] sm:$0xff]  ;;  %v958_v43 = vpack.c.bf16 %v398_v40, %v397_v39  ;;  %v399_v46 = vld [vmem:[#allocation5 + $0x210] sm:$0xff]  ;;  %v417_v49 = vld [vmem:[#allocation5 + $0x2a0] sm:$0xff] }
  0x6e   : > { %917 = vmatprep.subr.bf16.mxu0 %v916_v14  ;;  %v332_v44 = vld [vmem:[%s1345_s13 + $0x10] sm:$0xff]  ;;  %v960_v45 = vpack.c.bf16 %v416_v42, %v415_v41  ;;  %v418_v50 = vld [vmem:[#allocation5 + $0x2a8] sm:$0xff]  ;;  %v419_v55 = vld [vmem:[#allocation5 + $0x2b0] sm:$0xff] }
  0x6f   : > { %947 = vmatpush3.bf16.msra.mxu1 %v946_v13  ;;  %v400_v47 = vld [vmem:[#allocation5 + $0x218] sm:$0xff]  ;;  %v441_v48 = vcombine.high %v332_v44, %v332_v44  ;;  %v964_v52 = vpack.c.bf16 %v418_v50, %v417_v49  ;;  %v401_v53 = vld [vmem:[#allocation5 + $0x220] sm:$0xff]  ;;  %v402_v54 = vld [vmem:[#allocation5 + $0x228] sm:$0xff] }
  0x70   : > { %949 = vmatprep.subr.bf16.mxu1 %v948_v19  ;;  %v962_v51 = vpack.c.bf16 %v400_v47, %v399_v46  ;;  %v420_v56 = vld [vmem:[#allocation5 + $0x2b8] sm:$0xff]  ;;  %v966_v57 = vpack.c.bf16 %v402_v54, %v401_v53  ;;  %v403_v59 = vld [vmem:[#allocation5 + $0x230] sm:$0xff]  ;;  %v421_v61 = vld [vmem:[#allocation5 + $0x2c0] sm:$0xff] }
  0x71   : > { %919 = vmatpush3.bf16.msra.mxu0 %v918_v26  ;;  %v968_v58 = vpack.c.bf16 %v420_v56, %v419_v55  ;;  %v404_v60 = vld [vmem:[#allocation5 + $0x238] sm:$0xff]  ;;  %v422_v62 = vld [vmem:[#allocation5 + $0x2c8] sm:$0xff]  ;;  %v405_v1 = vld [vmem:[#allocation5 + $0x240] sm:$0xff] }
  0x72   : > { %921 = vmatprep.subr.bf16.mxu0 %v920_v28  ;;  %v970_v63 = vpack.c.bf16 %v404_v60, %v403_v59  ;;  %v972_v0 = vpack.c.bf16 %v422_v62, %v421_v61  ;;  %v406_v2 = vld [vmem:[#allocation5 + $0x248] sm:$0xff]  ;;  %v423_v3 = vld [vmem:[#allocation5 + $0x2d0] sm:$0xff]  ;;  %v424_v4 = vld [vmem:[#allocation5 + $0x2d8] sm:$0xff] }
  0x73   : > { %951 = vmatpush3.bf16.msra.mxu1 %v950_v27  ;;  %v974_v5 = vpack.c.bf16 %v406_v2, %v405_v1  ;;  %v976_v6 = vpack.c.bf16 %v424_v4, %v423_v3  ;;  %v407_v7 = vld [vmem:[#allocation5 + $0x250] sm:$0xff]  ;;  %v408_v8 = vld [vmem:[#allocation5 + $0x258] sm:$0xff]  ;;  %v425_v9 = vld [vmem:[#allocation5 + $0x2e0] sm:$0xff] }
  0x74   : > { %953 = vmatprep.subr.bf16.mxu1 %v952_v32  ;;  %v426_v10 = vld [vmem:[#allocation5 + $0x2e8] sm:$0xff]  ;;  %v978_v11 = vpack.c.bf16 %v408_v8, %v407_v7  ;;  %v409_v13 = vld [vmem:[#allocation5 + $0x260] sm:$0xff]  ;;  %v427_v15 = vld [vmem:[#allocation5 + $0x2f0] sm:$0xff] }
  0x75   : > { %923 = vmatpush3.bf16.msra.mxu0 %v922_v36  ;;  %v410_v14 = vld [vmem:[#allocation5 + $0x268] sm:$0xff]  ;;  %v428_v16 = vld [vmem:[#allocation5 + $0x2f8] sm:$0xff]  ;;  %v411_v19 = vld [vmem:[#allocation5 + $0x270] sm:$0xff] }
  0x76   : > { %957 = vmatprep.subr.bf16.mxu0 %v956_v38  ;;  %v982_v17 = vpack.c.bf16 %v410_v14, %v409_v13  ;;  %v984_v18 = vpack.c.bf16 %v428_v16, %v427_v15  ;;  %v412_v20 = vld [vmem:[#allocation5 + $0x278] sm:$0xff]  ;;  %v782_v23 = vld [vmem:[%s1417_s2] ss:$0 sm:$0xff] }
  0x77   : > { %955 = vmatpush3.bf16.msra.mxu1 %v954_v37  ;;  %v986_v21 = vpack.c.bf16 %v412_v20, %v411_v19  ;;  %v655_v34 = vld [vmem:[%s317_s25] sm:$0xf] }
  0x78   : > { %510 = vmatmul.mubr.f32.vlgmr.msra.gmra.mrb[0].mxu0 %v330_v12  ;;  %v980_v12 = vpack.c.bf16 %v426_v10, %v425_v9 }
  0x79   : > { %959 = vmatpush3.bf16.msra.mxu0 %v958_v43  ;;  %649 = vmatprep.mubr.f32.mxu0 %v441_v48 }
  0x7a   : > { %580 = vmatmul.mubr.f32.vlgmr.msra.gmra.mrb[0].mxu1 %v331_v22  ;;  %961 = vmatprep.subr.bf16.mxu0 %v960_v45 }
  0x7d   : > { %963 = vmatpush3.bf16.msra.mxu0 %v962_v51 }
  0x7e   : > { %965 = vmatprep.subr.bf16.mxu0 %v964_v52 }
  0x81   : > { %967 = vmatpush3.bf16.msra.mxu0 %v966_v57 }
  0x82   : > { %969 = vmatprep.subr.bf16.mxu0 %v968_v58 }
  0x85   : > { %971 = vmatpush3.bf16.msra.mxu0 %v970_v63 }
  0x86   : > { %973 = vmatprep.subr.bf16.mxu0 %v972_v0 }
  0x89   : > { %975 = vmatpush3.bf16.msra.mxu0 %v974_v5 }
  0x8a   : > { %977 = vmatprep.subr.bf16.mxu0 %v976_v6 }
  0x8d   : > { %979 = vmatpush3.bf16.msra.mxu0 %v978_v11 }
  0x8e   : > { %981 = vmatprep.subr.bf16.mxu0 %v980_v12 }
  0x91   : > { %983 = vmatpush3.bf16.msra.mxu0 %v982_v17 }
  0x92   : > { %985 = vmatprep.subr.bf16.mxu0 %v984_v18 }
  0x95   : > { %987 = vmatpush3.bf16.msra.mxu0 %v986_v21 }
  0x98   : > { %650 = vmatmul.mubr.f32.vlgmr.msra.gmra.mrb[2].mxu0 %v332_v44 }
 0x14b   : > { %v819_v22 = vpop.f32.mrb[0].mxu0 }
 0x14c   : > { %v820_v24 = vpop.f32.mrb[1].mxu0 }
 0x14d   : > { %v854_v25 = vpop.f32.mrb[0].mxu1  ;;  %v821_v26 = vadd.f32 %v820_v24, %v819_v22 }
 0x14e   : > { %v855_v27 = vpop.f32.mrb[1].mxu1 }
 0x14f   : > { %v856_v28 = vadd.f32 %v855_v27, %v854_v25  ;;  %v512_v29 = vadd.f32 %v821_v26, %v782_v23 }
 0x151   : > { %v582_v30 = vadd.f32 %v856_v28, %v512_v29 }
 0x16b   : > { %v889_v31 = vpop.f32.mrb[2].mxu0 }
 0x16c   : > { %v890_v32 = vpop.f32.mrb[3].mxu0 }
 0x16d   : > { %v891_v33 = vadd.f32 %v890_v32, %v889_v31 }
 0x16f   : > { %v652_v35 = vadd.f32 %v891_v33, %v582_v30 }
 0x171   : > { %v656_v36 = vadd.f32 %v655_v34, %v652_v35 }
 0x173   : > { %657 = vst [vmem:[%s301_s11] sm:$0xf] %v656_v36 }
 0x174   : > { %1124 = shalt.err (!%p1121_p5)
}
 0x175   : > { %s1125_s8 = scalar_lea.hbm %s1372_s23, 64  ;;  %s1129_s6 = scalar_lea.hbm %s1419_s4, 256 }
 0x176   : > { %p1126_p0 = scmp.ne.s32.totalorder %s1372_s23, %s1125_s8  ;;  %p1130_p1 = scmp.lt.u32.totalorder %s1372_s23, %s1419_s4 }
 0x177   : > { %p1131_p4 = scmp.lt.u32.totalorder %s1129_s6, %s1125_s8  ;;  %p1133_p8 = scmp.lt.u32.totalorder %s1125_s8, %s1372_s23 }
 0x178   : > { %p1127_p13 = pnand %p1126_p0, %p1296_p12 }
 0x179   : > { %p1132_p6 = por %p1131_p4, %p1130_p1 }
 0x17a   : > { %p1128_p2 = pneg %p1127_p13 }
 0x17b   : > { %p1134_p10 = por %p1133_p8, %p1132_p6 }
 0x17d   : > { %p1135_p3 = pnand %p1134_p10, %p1128_p2 }
 0x17f   : > { %1138 = shalt.err (!%p1135_p3)
}
 0x180   : > { %997 = dma.vmem_to_hbm [thread:$0]  (%p1296_p12), %s1374_s12, 64, %s1372_s23, %s659_s26  }
 0x181 PF: > { %p1014_p7 = scmp.ge.s32.totalorder %s1181_s18, 2  ;;  %s684_s25 = sand.u32 1, %s1169_s15  }
 0x182   : > { %p1434_p9 = scmp.ne.s32.totalorder %s1424_s22, 0  ;;  %s685_s29 = scalar_lea.sflag [#allocation4], %s684_s25 }
 0x184   : > { %p1008_p11 = pnand %p1014_p7, %p1434_p9 }
 0x186   : > { %1164 = dma.done.wait (!%p1008_p11), %s685_s29, 64  }
 0x187   : > { %1166 = vsyncadd (!%p1008_p11), %s685_s29, 4294967232  ;;  %p18_p5 = scmp.ge.s32.totalorder %s1266_s27, 6   ;;  %s1435_s15 = smov %s1173_s16 }
 0x188   : > { %s1436_s16 = smov %s1177_s17  ;;  %s1437_s17 = smov %s1292_s24 }
 0x189   : > { %s1438_s18 = smov %s1266_s27  ;;  %20 = sbr.rel (!%p18_p5) target bundleno = 6 (0x6), region = 88 }
 0x190   :  { %690 = vsyncpa [#allocation3], 1 }
 0x191   :  { %692 = vsyncpa [#allocation3 + $0x1], 1 }
 0x192   :  { %693 = vsyncpa [#allocation6], 1 }
 0x193   :  { %694 = vsyncpa [#allocation4], 1 }
 0x194   :  { %696 = vsyncpa [#allocation4 + $0x1], 1 }

</bundles_post_ra>
